<compile_context>
chip_gen: v6e
topology: v6e:2x2x1
jax: 0.10.0
libtpu: 0.0.40
codegen_flags: <defaults>
</compile_context>

<pallas_src>
import functools

import jax
import jax.numpy as jnp
from jax.experimental import pallas as pl
from jax.experimental.pallas import tpu as pltpu

_HID = 128  # hidden width fixed by the reference architecture


def _round_up(n, m):
    return ((n + m - 1) // m) * m


# -----------------------------------------------------------------------------
# Kernel
# -----------------------------------------------------------------------------
def _cs_ib_kernel(training, n_x, K, n_y, offs, out_w, *refs):
    if training:
        x_ref, eps_ref, a_ref, b_ref, out_ref = refs
    else:
        x_ref, a_ref, b_ref, out_ref = refs
        eps_ref = None

    x = x_ref[...]                                              # (TM, n_x)

    # ---- encoder L1 / L2 (MXU) ----
    w1 = a_ref[offs["w1"]:offs["w1"] + n_x, :]
    b1 = a_ref[offs["b1"]:offs["b1"] + 1, :]
    h = jnp.maximum(jnp.dot(x, w1, preferred_element_type=jnp.float32) + b1, 0.0)

    w2 = a_ref[offs["w2"]:offs["w2"] + _HID, :]
    b2 = a_ref[offs["b2"]:offs["b2"] + 1, :]
    h = jnp.maximum(jnp.dot(h, w2, preferred_element_type=jnp.float32) + b2, 0.0)

    # ---- one fused MXU pass: [decoder-L1 mean path | enc_mean | enc_logvar] ----
    w_big = b_ref[0:_HID, :]                                    # (128, 256)
    b_big = b_ref[_HID:_HID + 1, :]                             # (1, 256)
    fused = jnp.dot(h, w_big, preferred_element_type=jnp.float32) + b_big

    hd_pre = fused[:, :_HID]                  # = enc_mean @ wd1 + bd1 (pre-ReLU)
    enc_mean = fused[:, _HID:_HID + K]
    enc_logvar = fused[:, _HID + K:_HID + 2 * K]

    # ---- reparameterization (std = exp(logvar / 2), matching the torch code) ----
    if training:
        std = jnp.exp(enc_logvar * 0.5)
        noise = std * eps_ref[...]                              # (TM, K)
        latent = enc_mean + noise
        wd1 = a_ref[offs["wd1"]:offs["wd1"] + K, :]             # (K, 128)
        if K <= 8:
            # tiny contraction dim: VPU broadcast-FMAs instead of an MXU pass
            corr = noise[:, 0:1] * wd1[0:1, :]
            for k in range(1, K):
                corr = corr + noise[:, k:k + 1] * wd1[k:k + 1, :]
        else:
            corr = jnp.dot(noise, wd1, preferred_element_type=jnp.float32)
        hd_pre = hd_pre + corr
    else:
        latent = enc_mean

    hd = jnp.maximum(hd_pre, 0.0)

    # ---- decoder L2 ----
    wd2t = a_ref[offs["wd2t"]:offs["wd2t"] + n_y, :]            # (n_y, 128)
    bd2 = a_ref[offs["bd2"]:offs["bd2"] + 1, 0:n_y]             # (1, n_y)
    if n_y == 1:
        # VPU multiply + lane reduction; avoids a 1-lane-wide MXU output
        logits = jnp.sum(hd * wd2t, axis=-1, keepdims=True) + bd2
    else:
        logits = jax.lax.dot_general(
            hd, wd2t, (((1,), (1,)), ((), ())),
            preferred_element_type=jnp.float32) + bd2

    # ---- single lane-dense store: [latent | logits | zero pad] ----
    pad = out_w - (K + n_y)
    pieces = [latent, logits]
    if pad > 0:
        pieces.append(jnp.zeros((latent.shape[0], pad), jnp.float32))
    out_ref[...] = jnp.concatenate(pieces, axis=-1)


# -----------------------------------------------------------------------------
# Host-side parameter packing (algebraic prefolds + 2 VMEM-resident slabs)
# -----------------------------------------------------------------------------
def _pack_params(params):
    n_x, h1 = params["w1"].shape
    K = params["w3"].shape[1]
    n_y = params["wd2"].shape[1]
    assert h1 == _HID and params["w2"].shape == (_HID, _HID)
    assert params["wd1"].shape == (K, _HID) and params["wd2"].shape[0] == _HID
    assert 2 * K <= _HID and n_y <= _HID

    hp = jax.lax.Precision.HIGHEST  # keep the prefold fp32-exact

    # encoder L3 folded into the mean / logvar heads
    w_em = jnp.dot(params["w3"], params["wm"], precision=hp)            # (128, K)
    b_em = jnp.dot(params["b3"], params["wm"], precision=hp) + params["bm"]
    w_el = jnp.dot(params["w3"], params["ws"], precision=hp)            # (128, K)
    b_el = jnp.dot(params["b3"], params["ws"], precision=hp) + params["bs"]
    # mean path further folded through decoder L1 (pre-ReLU)
    w_md = jnp.dot(w_em, params["wd1"], precision=hp)                   # (128, 128)
    b_md = jnp.dot(b_em, params["wd1"], precision=hp) + params["bd1"]   # (1, 128)

    # slab B: fused head weight (rows 0..127) + its bias row (row 128), 256 lanes
    slab_b = jnp.zeros((_round_up(_HID + 1, 8), 2 * _HID), jnp.float32)
    slab_b = slab_b.at[:_HID, :_HID].set(w_md)
    slab_b = slab_b.at[:_HID, _HID:_HID + K].set(w_em)
    slab_b = slab_b.at[:_HID, _HID + K:_HID + 2 * K].set(w_el)
    slab_b = slab_b.at[_HID, :_HID].set(b_md[0])
    slab_b = slab_b.at[_HID, _HID:_HID + K].set(b_em[0])
    slab_b = slab_b.at[_HID, _HID + K:_HID + 2 * K].set(b_el[0])

    # slab A: every 128-lane-wide operand stacked at 8-row-aligned offsets
    offs = {}
    offs["w1"] = 0
    offs["b1"] = _round_up(n_x, 8)
    offs["w2"] = offs["b1"] + 8
    offs["b2"] = offs["w2"] + _HID
    offs["wd1"] = offs["b2"] + 8
    offs["wd2t"] = offs["wd1"] + _round_up(K, 8)
    offs["bd2"] = offs["wd2t"] + _round_up(n_y, 8)
    rows = offs["bd2"] + 8

    slab_a = jnp.zeros((rows, _HID), jnp.float32)
    slab_a = slab_a.at[offs["w1"]:offs["w1"] + n_x, :].set(params["w1"])
    slab_a = slab_a.at[offs["b1"]:offs["b1"] + 1, :].set(params["b1"])
    slab_a = slab_a.at[offs["w2"]:offs["w2"] + _HID, :].set(params["w2"])
    slab_a = slab_a.at[offs["b2"]:offs["b2"] + 1, :].set(params["b2"])
    slab_a = slab_a.at[offs["wd1"]:offs["wd1"] + K, :].set(params["wd1"])
    slab_a = slab_a.at[offs["wd2t"]:offs["wd2t"] + n_y, :].set(params["wd2"].T)
    slab_a = slab_a.at[offs["bd2"]:offs["bd2"] + 1, :n_y].set(params["bd2"])
    return slab_a, slab_b, offs, (n_x, K, n_y)


def _choose_tile(B):
    # Big tiles amortize the ~0.35 us per-grid-step overhead.  For B > 256 the
    # grid always has >= 2 steps so "parallel" can shard batch tiles across
    # v7x's two TensorCores; TM <= 512 keeps double-buffered blocks (~2 MiB
    # total) far under v7x's 64 MiB physical / 32 MiB default scoped VMEM.
    if B <= 256:
        return _round_up(B, 8)
    return min(512, _round_up(pl.cdiv(B, 2), 8))


# -----------------------------------------------------------------------------
# Forward wrapper
# -----------------------------------------------------------------------------
@functools.partial(jax.jit, static_argnames=("training",))
def cs_ib_forward(x, eps, params, training=True):
    """x: (B, n_x) f32; eps: (B, K) f32 (ignored / may be None when
    training=False); params: dict of weights/biases.  Returns (t, logits_y)."""
    if training and eps is None:
        raise ValueError("eps must be provided when training=True")

    B = x.shape[0]
    slab_a, slab_b, offs, (n_x, K, n_y) = _pack_params(params)
    assert x.shape == (B, n_x)

    out_w = _round_up(K + n_y, _HID)      # lane-dense packed output width

    TM = _choose_tile(B)
    B_pad = _round_up(B, TM)
    grid = (B_pad // TM,)

    if B_pad != B:
        x = jnp.pad(x, ((0, B_pad - B), (0, 0)))

    in_specs = [pl.BlockSpec((TM, n_x), lambda i: (i, 0))]
    operands = [x]
    if training:
        assert eps.shape == (B, K)
        if B_pad != B:
            eps = jnp.pad(eps, ((0, B_pad - B), (0, 0)))
        in_specs.append(pl.BlockSpec((TM, K), lambda i: (i, 0)))
        operands.append(eps)
    # weight slabs stay VMEM-resident across batch tiles (constant index_map)
    in_specs.append(pl.BlockSpec(slab_a.shape, lambda i: (0, 0)))
    in_specs.append(pl.BlockSpec(slab_b.shape, lambda i: (0, 0)))
    operands += [slab_a, slab_b]

    out = pl.pallas_call(
        functools.partial(_cs_ib_kernel, training, n_x, K, n_y, offs, out_w),
        out_shape=jax.ShapeDtypeStruct((B_pad, out_w), jnp.float32),
        grid=grid,
        in_specs=in_specs,
        out_specs=pl.BlockSpec((TM, out_w), lambda i: (i, 0)),
        compiler_params=pltpu.CompilerParams(
            dimension_semantics=("parallel",)),
    )(*operands)

    t = out[:B, :K]
    logits = out[:B, K:K + n_y]
    # torch: logits_y = decoder(t).squeeze() -- squeeze only the n_y axis so a
    # batch of size 1 keeps its batch dimension (deliberate deviation).
    if n_y == 1:
        logits = jnp.squeeze(logits, axis=-1)
    return t, logits


# -----------------------------------------------------------------------------
# Reference (layer-by-layer, mirrors the PyTorch module) and param init
# -----------------------------------------------------------------------------
def _reference_forward(x, eps, params, training):
    hp = jax.lax.Precision.HIGHEST
    h = jnp.maximum(jnp.dot(x, params["w1"], precision=hp) + params["b1"], 0.0)
    h = jnp.maximum(jnp.dot(h, params["w2"], precision=hp) + params["b2"], 0.0)
    t3 = jnp.dot(h, params["w3"], precision=hp) + params["b3"]
    enc_mean = jnp.dot(t3, params["wm"], precision=hp) + params["bm"]
    enc_logvar = jnp.dot(t3, params["ws"], precision=hp) + params["bs"]
    if training:
        latent = jnp.exp(0.5 * enc_logvar) * eps + enc_mean
    else:
        latent = enc_mean
    hd = jnp.maximum(jnp.dot(latent, params["wd1"], precision=hp) + params["bd1"], 0.0)
    logits = jnp.dot(hd, params["wd2"], precision=hp) + params["bd2"]
    if logits.shape[-1] == 1:
        logits = jnp.squeeze(logits, axis=-1)
    return latent, logits


def init_params(key, n_x, K, n_y):
    """Deterministic PyTorch-style Linear init: U(-1/sqrt(fan_in), 1/sqrt(fan_in))."""
    def linear(key, fan_in, fan_out):
        kw, kb = jax.random.split(key)
        bound = 1.0 / jnp.sqrt(jnp.float32(fan_in))
        w = jax.random.uniform(kw, (fan_in, fan_out), jnp.float32, -bound, bound)
        b = jax.random.uniform(kb, (1, fan_out), jnp.float32, -bound, bound)
        return w, b

    keys = jax.random.split(key, 8)
    p = {}
    p["w1"], p["b1"] = linear(keys[0], n_x, _HID)    # encoder L1
    p["w2"], p["b2"] = linear(keys[1], _HID, _HID)   # encoder L2
    p["w3"], p["b3"] = linear(keys[2], _HID, K)      # encoder L3
    p["wm"], p["bm"] = linear(keys[3], K, K)         # enc_mean
    p["ws"], p["bs"] = linear(keys[4], K, K)         # enc_std
    p["wd1"], p["bd1"] = linear(keys[5], K, _HID)    # decoder L1
    p["wd2"], p["bd2"] = linear(keys[6], _HID, n_y)  # decoder L2
    return p


if __name__ == "__main__":
    # Housing-style small shapes: 13 input features, bottleneck K=2, scalar output.
    B, n_x, K, n_y = 8, 13, 2, 1

    key = jax.random.PRNGKey(0)
    k_x, k_eps, k_p, k_x2, k_eps2 = jax.random.split(key, 5)

    x = jax.random.normal(k_x, (B, n_x), jnp.float32)
    eps = jax.random.normal(k_eps, (B, K), jnp.float32)   # torch.randn_like(std)
    params = init_params(k_p, n_x, K, n_y)

    # ---- training path ----
    t, logits_y = cs_ib_forward(x, eps, params, training=True)
    jax.block_until_ready((t, logits_y))
    assert t.shape == (B, K)
    assert logits_y.shape == (B,)
    t_ref, y_ref = _reference_forward(x, eps, params, True)
    assert bool(jnp.allclose(t, t_ref, atol=2e-2, rtol=2e-2))
    assert bool(jnp.allclose(logits_y, y_ref, atol=2e-2, rtol=2e-2))

    # ---- eval path (no eps DMA, latent = enc_mean, no decoder-L1 correction) ----
    t_eval, logits_eval = cs_ib_forward(x, None, params, training=False)
    jax.block_until_ready((t_eval, logits_eval))
    assert t_eval.shape == (B, K)
    assert logits_eval.shape == (B,)
    t_er, y_er = _reference_forward(x, eps, params, False)
    assert bool(jnp.allclose(t_eval, t_er, atol=2e-2, rtol=2e-2))
    assert bool(jnp.allclose(logits_eval, y_er, atol=2e-2, rtol=2e-2))

    # ---- exercise the host-side batch-padding path (B not a tile multiple) ----
    B2 = 20
    x2 = jax.random.normal(k_x2, (B2, n_x), jnp.float32)
    eps2 = jax.random.normal(k_eps2, (B2, K), jnp.float32)
    t2, y2 = cs_ib_forward(x2, eps2, params, training=True)
    jax.block_until_ready((t2, y2))
    assert t2.shape == (B2, K) and y2.shape == (B2,)
    t2_ref, y2_ref = _reference_forward(x2, eps2, params, True)
    assert bool(jnp.allclose(t2, t2_ref, atol=2e-2, rtol=2e-2))
    assert bool(jnp.allclose(y2, y2_ref, atol=2e-2, rtol=2e-2))

    print("KERNEL_OK")
</pallas_src>

<mosaic_0001>
module attributes {stable_mosaic.version = 11 : i64} {
  func.func @_cs_ib_kernel(%arg0: i32, %arg1: memref<8x13xf32, #tpu.memory_space<vmem>>, %arg2: memref<8x2xf32, #tpu.memory_space<vmem>>, %arg3: memref<184x128xf32, #tpu.memory_space<vmem>>, %arg4: memref<136x256xf32, #tpu.memory_space<vmem>>, %arg5: memref<8x128xf32, #tpu.memory_space<vmem>>) attributes {dimension_semantics = [#tpu.dimension_semantics<parallel>], iteration_bounds = array<i64: 1>, scalar_prefetch = 0 : i64, scratch_operands = 0 : i64, tpu.core_type = #tpu.core_type<tc>, window_params = [{transform_indices = @transform_0, window_bounds = array<i64: 8, 13>}, {transform_indices = @transform_1, window_bounds = array<i64: 8, 2>}, {pipeline_mode = #tpu.pipeline_mode<synchronous>, transform_indices = @transform_2, window_bounds = array<i64: 184, 128>}, {pipeline_mode = #tpu.pipeline_mode<synchronous>, transform_indices = @transform_3, window_bounds = array<i64: 136, 256>}, {transform_indices = @transform_4, window_bounds = array<i64: 8, 128>}]} {
    %c0 = arith.constant 0 : index
    %c0_0 = arith.constant 0 : index
    %0 = vector.load %arg1[%c0, %c0_0] : memref<8x13xf32, #tpu.memory_space<vmem>>, vector<8x13xf32>
    %c0_1 = arith.constant 0 : index
    %c0_2 = arith.constant 0 : index
    %1 = vector.load %arg3[%c0_1, %c0_2] : memref<184x128xf32, #tpu.memory_space<vmem>>, vector<13x128xf32>
    %c16 = arith.constant 16 : index
    %c0_3 = arith.constant 0 : index
    %2 = vector.load %arg3[%c16, %c0_3] : memref<184x128xf32, #tpu.memory_space<vmem>>, vector<1x128xf32>
    %cst = arith.constant dense<0.000000e+00> : vector<8x128xf32>
    %3 = tpu.matmul %0, %1, %cst {dimension_numbers = #tpu.dot_dimension_numbers<[1], [0], [0], [1], [0, 0, 1, 1], [], []>} : vector<8x13xf32>, vector<13x128xf32>, vector<8x128xf32> -> vector<8x128xf32>
    %4 = vector.broadcast %2 : vector<1x128xf32> to vector<8x128xf32>
    %5 = arith.addf %3, %4 : vector<8x128xf32>
    %cst_4 = arith.constant 0.000000e+00 : f32
    %6 = vector.broadcast %cst_4 : f32 to vector<8x128xf32>
    %7 = arith.maximumf %5, %6 : vector<8x128xf32>
    %c24 = arith.constant 24 : index
    %c0_5 = arith.constant 0 : index
    %8 = vector.load %arg3[%c24, %c0_5] : memref<184x128xf32, #tpu.memory_space<vmem>>, vector<128x128xf32>
    %c152 = arith.constant 152 : index
    %c0_6 = arith.constant 0 : index
    %9 = vector.load %arg3[%c152, %c0_6] : memref<184x128xf32, #tpu.memory_space<vmem>>, vector<1x128xf32>
    %cst_7 = arith.constant dense<0.000000e+00> : vector<8x128xf32>
    %10 = tpu.matmul %7, %8, %cst_7 {dimension_numbers = #tpu.dot_dimension_numbers<[1], [0], [0], [1], [0, 0, 1, 1], [], []>} : vector<8x128xf32>, vector<128x128xf32>, vector<8x128xf32> -> vector<8x128xf32>
    %11 = vector.broadcast %9 : vector<1x128xf32> to vector<8x128xf32>
    %12 = arith.addf %10, %11 : vector<8x128xf32>
    %cst_8 = arith.constant 0.000000e+00 : f32
    %13 = vector.broadcast %cst_8 : f32 to vector<8x128xf32>
    %14 = arith.maximumf %12, %13 : vector<8x128xf32>
    %c0_9 = arith.constant 0 : index
    %c0_10 = arith.constant 0 : index
    %15 = vector.load %arg4[%c0_9, %c0_10] : memref<136x256xf32, #tpu.memory_space<vmem>>, vector<128x256xf32>
    %c128 = arith.constant 128 : index
    %c0_11 = arith.constant 0 : index
    %16 = vector.load %arg4[%c128, %c0_11] : memref<136x256xf32, #tpu.memory_space<vmem>>, vector<1x256xf32>
    %cst_12 = arith.constant dense<0.000000e+00> : vector<8x256xf32>
    %17 = tpu.matmul %14, %15, %cst_12 {dimension_numbers = #tpu.dot_dimension_numbers<[1], [0], [0], [1], [0, 0, 1, 1], [], []>} : vector<8x128xf32>, vector<128x256xf32>, vector<8x256xf32> -> vector<8x256xf32>
    %18 = vector.broadcast %16 : vector<1x256xf32> to vector<8x256xf32>
    %19 = arith.addf %17, %18 : vector<8x256xf32>
    %20 = vector.extract_strided_slice %19 {offsets = [0, 0], sizes = [8, 128], strides = [1, 1]} : vector<8x256xf32> to vector<8x128xf32>
    %21 = vector.extract_strided_slice %19 {offsets = [0, 128], sizes = [8, 2], strides = [1, 1]} : vector<8x256xf32> to vector<8x2xf32>
    %22 = vector.extract_strided_slice %19 {offsets = [0, 130], sizes = [8, 2], strides = [1, 1]} : vector<8x256xf32> to vector<8x2xf32>
    %cst_13 = arith.constant 5.000000e-01 : f32
    %23 = vector.broadcast %cst_13 : f32 to vector<8x2xf32>
    %24 = arith.mulf %22, %23 : vector<8x2xf32>
    %25 = math.exp %24 : vector<8x2xf32>
    %c0_14 = arith.constant 0 : index
    %c0_15 = arith.constant 0 : index
    %26 = vector.load %arg2[%c0_14, %c0_15] : memref<8x2xf32, #tpu.memory_space<vmem>>, vector<8x2xf32>
    %27 = arith.mulf %25, %26 : vector<8x2xf32>
    %28 = arith.addf %21, %27 : vector<8x2xf32>
    %c160 = arith.constant 160 : index
    %c0_16 = arith.constant 0 : index
    %29 = vector.load %arg3[%c160, %c0_16] : memref<184x128xf32, #tpu.memory_space<vmem>>, vector<2x128xf32>
    %30 = vector.extract_strided_slice %27 {offsets = [0, 0], sizes = [8, 1], strides = [1, 1]} : vector<8x2xf32> to vector<8x1xf32>
    %31 = vector.extract_strided_slice %29 {offsets = [0, 0], sizes = [1, 128], strides = [1, 1]} : vector<2x128xf32> to vector<1x128xf32>
    %32 = vector.broadcast %30 : vector<8x1xf32> to vector<8x128xf32>
    %33 = vector.broadcast %31 : vector<1x128xf32> to vector<8x128xf32>
    %34 = arith.mulf %32, %33 : vector<8x128xf32>
    %35 = vector.extract_strided_slice %27 {offsets = [0, 1], sizes = [8, 1], strides = [1, 1]} : vector<8x2xf32> to vector<8x1xf32>
    %36 = vector.extract_strided_slice %29 {offsets = [1, 0], sizes = [1, 128], strides = [1, 1]} : vector<2x128xf32> to vector<1x128xf32>
    %37 = vector.broadcast %35 : vector<8x1xf32> to vector<8x128xf32>
    %38 = vector.broadcast %36 : vector<1x128xf32> to vector<8x128xf32>
    %39 = arith.mulf %37, %38 : vector<8x128xf32>
    %40 = arith.addf %34, %39 : vector<8x128xf32>
    %41 = arith.addf %20, %40 : vector<8x128xf32>
    %cst_17 = arith.constant 0.000000e+00 : f32
    %42 = vector.broadcast %cst_17 : f32 to vector<8x128xf32>
    %43 = arith.maximumf %41, %42 : vector<8x128xf32>
    %c168 = arith.constant 168 : index
    %c0_18 = arith.constant 0 : index
    %44 = vector.load %arg3[%c168, %c0_18] : memref<184x128xf32, #tpu.memory_space<vmem>>, vector<1x128xf32>
    %c176 = arith.constant 176 : index
    %c0_19 = arith.constant 0 : index
    %45 = vector.load %arg3[%c176, %c0_19] : memref<184x128xf32, #tpu.memory_space<vmem>>, vector<1x1xf32>
    %46 = vector.broadcast %44 : vector<1x128xf32> to vector<8x128xf32>
    %47 = arith.mulf %43, %46 : vector<8x128xf32>
    %cst_20 = arith.constant dense<0.000000e+00> : vector<8xf32>
    %48 = vector.multi_reduction <add>, %47, %cst_20 [1] : vector<8x128xf32> to vector<8xf32>
    %49 = vector.shape_cast %48 : vector<8xf32> to vector<8x1xf32>
    %50 = vector.broadcast %45 : vector<1x1xf32> to vector<8x1xf32>
    %51 = arith.addf %49, %50 : vector<8x1xf32>
    %cst_21 = arith.constant 0.000000e+00 : f32
    %52 = vector.broadcast %cst_21 : f32 to vector<8x125xf32>
    %53 = tpu.concatenate %28, %51, %52 in 1 : vector<8x2xf32>, vector<8x1xf32>, vector<8x125xf32> -> vector<8x128xf32>
    %c0_22 = arith.constant 0 : index
    %c0_23 = arith.constant 0 : index
    %54 = vector.load %arg5[%c0_22, %c0_23] : memref<8x128xf32, #tpu.memory_space<vmem>>, vector<8x128xf32>
    tpu.vector_store %arg5[%c0_22, %c0_23], %53 {strides = array<i32>} : memref<8x128xf32, #tpu.memory_space<vmem>>, vector<8x128xf32>,
    return
  }
  func.func @transform_0(%arg0: i32) -> (i32, i32) {
    %c0_i32 = arith.constant 0 : i32
    %c0_i32_0 = arith.constant 0 : i32
    return %arg0, %c0_i32 : i32, i32
  }
  func.func @transform_1(%arg0: i32) -> (i32, i32) {
    %c0_i32 = arith.constant 0 : i32
    %c0_i32_0 = arith.constant 0 : i32
    return %arg0, %c0_i32 : i32, i32
  }
  func.func @transform_2(%arg0: i32) -> (i32, i32) {
    %c0_i32 = arith.constant 0 : i32
    %c0_i32_0 = arith.constant 0 : i32
    %c0_i32_1 = arith.constant 0 : i32
    return %c0_i32, %c0_i32_0 : i32, i32
  }
  func.func @transform_3(%arg0: i32) -> (i32, i32) {
    %c0_i32 = arith.constant 0 : i32
    %c0_i32_0 = arith.constant 0 : i32
    %c0_i32_1 = arith.constant 0 : i32
    return %c0_i32, %c0_i32_0 : i32, i32
  }
  func.func @transform_4(%arg0: i32) -> (i32, i32) {
    %c0_i32 = arith.constant 0 : i32
    %c0_i32_0 = arith.constant 0 : i32
    return %arg0, %c0_i32 : i32, i32
  }
}

</mosaic_0001>

<bundles_post_ra>
// kernel: cs_ib_forward.1
= control target key start
LH: loop header
LB: loop body
LE: loop exit
PB: predicated region body
PF: predicated region fallthrough
CT: control target
= control target key end

     0   :  { %vm29_vm0 = vcmask 1044480   ;;  %v455_v0 = vmov 0.0   ;;  %vm456_vm1 = vmmov 0   ;;  %vm25_vm2 = vcmask 105472   ;;  %s457_s13 = smov 2   ;;  %s460_s17 = smov 126   ;;  %s667_s2 = inlined_call_operand.vmem [shape: f32[184,128], index: 2, kind: input, shape index: {}]   ;;  %s668_s0 = inlined_call_operand.vmem [shape: f32[8,13], index: 0, kind: input, shape index: {}]   ;;  %s669_s3 = inlined_call_operand.vmem [shape: f32[136,256], index: 3, kind: input, shape index: {}]   ;;  %s670_s1 = inlined_call_operand.vmem [shape: f32[8,2], index: 1, kind: input, shape index: {}]   ;;  %s671_s4 = inlined_call_operand.vmem [shape: f32[8,128], index: 4, kind: output, shape index: {}]  }
   0x1   :  { %402 = vmatprep.subr.mxu0 %v455_v0  ;;  %v19_v1 = vld [vmem:[%s667_s2 + $0x8] sm:$0x1f]  ;;  %v18_v2 = vld [vmem:[%s667_s2] sm:$0xff]  ;;  %406 = vmatprep.mubr.msk.f32.mxu0 %vm456_vm1, %v455_v0  ;;  %v119_v4 = vld [vmem:[%s667_s2 + $0x90] sm:$0xff]  ;;  %v458_v63 = vmov 3   ;;  %vm366_vm3 = vcmask 15360  }
   0x2   :  { %403 = vmatpush3.msk.msra.mxu0 %vm29_vm0, %v19_v1  ;;  %v17_v3 = vld [vmem:[%s668_s0] sm:$0xff]  ;;  %409 = vmatprep.subr.mxu1 %v455_v0  ;;  %v118_v5 = vld [vmem:[%s667_s2 + $0x88] sm:$0xff]  ;;  %v116_v7 = vld [vmem:[%s667_s2 + $0x78] sm:$0xff]  ;;  %v231_v1 = vlaneseq  ;;  %vm368_vm4 = vcmask 23552  }
   0x3   :  { %404 = vmatprep.subr.mxu0 %v455_v0  ;;  %410 = vmatpush3.msra.mxu1 %v119_v4  ;;  %v117_v6 = vld [vmem:[%s667_s2 + $0x80] sm:$0xff]  ;;  %v115_v8 = vld [vmem:[%s667_s2 + $0x70] sm:$0xff]  ;;  %v114_v9 = vld [vmem:[%s667_s2 + $0x68] sm:$0xff] }
   0x4   :  { %405 = vmatpush3.msra.mxu0 %v18_v2  ;;  %411 = vmatprep.subr.mxu1 %v455_v0  ;;  %v113_v10 = vld [vmem:[%s667_s2 + $0x60] sm:$0xff]  ;;  %v112_v11 = vld [vmem:[%s667_s2 + $0x58] sm:$0xff]  ;;  %v111_v12 = vld [vmem:[%s667_s2 + $0x50] sm:$0xff]  ;;  %v232_v2 = vshrl.u32 %v231_v1, 7 }
   0x5   :  { %407 = vmatmul.mubr.msk.f32.vlgmr.msra.gmra.mxu0 %vm25_vm2, %v17_v3  ;;  %412 = vmatpush3.msra.mxu1 %v118_v5  ;;  %v110_v13 = vld [vmem:[%s667_s2 + $0x48] sm:$0xff]  ;;  %v109_v14 = vld [vmem:[%s667_s2 + $0x40] sm:$0xff]  ;;  %v108_v15 = vld [vmem:[%s667_s2 + $0x38] sm:$0xff] }
   0x6   :  { %413 = vmatprep.subr.mxu1 %v455_v0  ;;  %441 = vmatprep.mubr.msk.f32.mxu1 %vm456_vm1, %v455_v0  ;;  %v107_v16 = vld [vmem:[%s667_s2 + $0x30] sm:$0xff]  ;;  %v106_v17 = vld [vmem:[%s667_s2 + $0x28] sm:$0xff]  ;;  %v105_v18 = vld [vmem:[%s667_s2 + $0x20] sm:$0xff]  ;;  %v237_v3 = vsub.s32 1, %v232_v2 }
   0x7   :  { %414 = vmatpush3.msra.mxu1 %v117_v6  ;;  %305 = vmatprep.mubr.f32.mxu0 %v455_v0  ;;  %v104_v19 = vld [vmem:[%s667_s2 + $0x18] sm:$0xff]  ;;  %v226_v21 = vld [vmem:[%s669_s3 + $0xf0] sm:$0xff]  ;;  %v225_v22 = vld [vmem:[%s669_s3 + $0xe8] sm:$0xff] }
   0x8   :  { %415 = vmatprep.subr.mxu1 %v455_v0  ;;  %v227_v20 = vld [vmem:[%s669_s3 + $0xf8] sm:$0xff]  ;;  %v224_v23 = vld [vmem:[%s669_s3 + $0xe0] sm:$0xff]  ;;  %v222_v25 = vld [vmem:[%s669_s3 + $0xd0] sm:$0xff]  ;;  %451 = vset.pattern.permute.xlu1 %v458_v63 }
   0x9   :  { %416 = vmatpush3.msra.mxu1 %v116_v7  ;;  %241 = vmatprep.subr.mxu0 %v227_v20  ;;  %v223_v24 = vld [vmem:[%s669_s3 + $0xd8] sm:$0xff]  ;;  %v221_v26 = vld [vmem:[%s669_s3 + $0xc8] sm:$0xff]  ;;  %v220_v27 = vld [vmem:[%s669_s3 + $0xc0] sm:$0xff] }
   0xa   :  { %417 = vmatprep.subr.mxu1 %v455_v0  ;;  %242 = vmatpush1.msra.mxu0 %v226_v21  ;;  %v219_v28 = vld [vmem:[%s669_s3 + $0xb8] sm:$0xff]  ;;  %v218_v29 = vld [vmem:[%s669_s3 + $0xb0] sm:$0xff]  ;;  %v217_v30 = vld [vmem:[%s669_s3 + $0xa8] sm:$0xff] }
   0xb   :  { %418 = vmatpush3.msra.mxu1 %v115_v8  ;;  %243 = vmatprep.subr.mxu0 %v225_v22  ;;  %v216_v31 = vld [vmem:[%s669_s3 + $0xa0] sm:$0xff]  ;;  %v215_v32 = vld [vmem:[%s669_s3 + $0x98] sm:$0xff]  ;;  %v214_v33 = vld [vmem:[%s669_s3 + $0x90] sm:$0xff] }
   0xc   :  { %419 = vmatprep.subr.mxu1 %v455_v0  ;;  %244 = vmatpush1.msra.mxu0 %v224_v23  ;;  %v213_v34 = vld [vmem:[%s669_s3 + $0x88] sm:$0xff]  ;;  %v212_v35 = vld [vmem:[%s669_s3 + $0x80] sm:$0xff]  ;;  %v211_v36 = vld [vmem:[%s669_s3 + $0x78] sm:$0xff] }
   0xd   :  { %420 = vmatpush3.msra.mxu1 %v114_v9  ;;  %245 = vmatprep.subr.mxu0 %v223_v24  ;;  %v210_v37 = vld [vmem:[%s669_s3 + $0x70] sm:$0xff]  ;;  %v209_v38 = vld [vmem:[%s669_s3 + $0x68] sm:$0xff]  ;;  %v208_v39 = vld [vmem:[%s669_s3 + $0x60] sm:$0xff] }
   0xe   :  { %421 = vmatprep.subr.mxu1 %v455_v0  ;;  %246 = vmatpush1.msra.mxu0 %v222_v25  ;;  %v207_v40 = vld [vmem:[%s669_s3 + $0x58] sm:$0xff]  ;;  %v206_v41 = vld [vmem:[%s669_s3 + $0x50] sm:$0xff]  ;;  %v205_v42 = vld [vmem:[%s669_s3 + $0x48] sm:$0xff] }
   0xf   :  { %422 = vmatpush3.msra.mxu1 %v113_v10  ;;  %247 = vmatprep.subr.mxu0 %v221_v26  ;;  %v204_v43 = vld [vmem:[%s669_s3 + $0x40] sm:$0xff]  ;;  %v203_v44 = vld [vmem:[%s669_s3 + $0x38] sm:$0xff]  ;;  %v202_v45 = vld [vmem:[%s669_s3 + $0x30] sm:$0xff] }
  0x10   :  { %423 = vmatprep.subr.mxu1 %v455_v0  ;;  %248 = vmatpush1.msra.mxu0 %v220_v27  ;;  %v201_v46 = vld [vmem:[%s669_s3 + $0x28] sm:$0xff]  ;;  %v375_v47 = vld [vmem:[%s667_s2 + $0x10] ss:$0 sm:$0xff]  ;;  %v200_v52 = vld [vmem:[%s669_s3 + $0x20] sm:$0xff] }
  0x11   :  { %424 = vmatpush3.msra.mxu1 %v112_v11  ;;  %249 = vmatprep.subr.mxu0 %v219_v28  ;;  %v199_v53 = vld [vmem:[%s669_s3 + $0x18] sm:$0xff]  ;;  %v198_v54 = vld [vmem:[%s669_s3 + $0x10] sm:$0xff]  ;;  %v197_v55 = vld [vmem:[%s669_s3 + $0x8] sm:$0xff] }
  0x12   :  { %425 = vmatprep.subr.mxu1 %v455_v0  ;;  %250 = vmatpush1.msra.mxu0 %v218_v29  ;;  %v196_v56 = vld [vmem:[%s669_s3] sm:$0xff]  ;;  %v378_v58 = vld [vmem:[%s667_s2 + $0x98] ss:$0 sm:$0xff]  ;;  %v380_v26 = vld [vmem:[%s667_s2 + $0xa8] ss:$0 sm:$0xff] }
  0x13   :  { %426 = vmatpush3.msra.mxu1 %v111_v12  ;;  %251 = vmatprep.subr.mxu0 %v217_v30  ;;  %v315_v57 = vld [vmem:[%s670_s1] sm:$0xff]  ;;  %v381_v29 = vld [vmem:[%s667_s2 + $0xb0] ss:$0 sm:$0xff] }
  0x14   :  { %427 = vmatprep.subr.mxu1 %v455_v0  ;;  %252 = vmatpush1.msra.mxu0 %v216_v31  ;;  %v379_v4 = vld [vmem:[%s669_s3 + $0x100] ss:$8 sm:$0x3] }
  0x15   :  { %428 = vmatpush3.msra.mxu1 %v110_v13  ;;  %253 = vmatprep.subr.mxu0 %v215_v32  ;;  %v238_v5 = vrot.slane %v379_v4, %v237_v3 }
  0x16   :  { %429 = vmatprep.subr.mxu1 %v455_v0  ;;  %254 = vmatpush1.msra.mxu0 %v214_v33 }
  0x17   :  { %430 = vmatpush3.msra.mxu1 %v109_v14  ;;  %255 = vmatprep.subr.mxu0 %v213_v34  ;;  %v326_v14 = vld [vmem:[%s667_s2 + $0xa0] sm:$0x3] }
  0x18   :  { %431 = vmatprep.subr.mxu1 %v455_v0  ;;  %256 = vmatpush1.msra.mxu0 %v212_v35 }
  0x19   :  { %432 = vmatpush3.msra.mxu1 %v108_v15  ;;  %257 = vmatprep.subr.mxu0 %v211_v36  ;;  %v233_v15 = vsub.s32 0, %v232_v2 }
  0x1a   :  { %433 = vmatprep.subr.mxu1 %v455_v0  ;;  %258 = vmatpush1.msra.mxu0 %v210_v37 }
  0x1b   :  { %434 = vmatpush3.msra.mxu1 %v107_v16  ;;  %259 = vmatprep.subr.mxu0 %v209_v38  ;;  %v343_v16 = vrot.slane %v326_v14, %v237_v3 }
  0x1c   :  { %435 = vmatprep.subr.mxu1 %v455_v0  ;;  %260 = vmatpush1.msra.mxu0 %v208_v39 }
  0x1d   :  { %436 = vmatpush3.msra.mxu1 %v106_v17  ;;  %261 = vmatprep.subr.mxu0 %v207_v40  ;;  %v334_v17 = vrot.slane %v326_v14, %v233_v15 }
  0x1e   :  { %437 = vmatprep.subr.mxu1 %v455_v0  ;;  %262 = vmatpush1.msra.mxu0 %v206_v41 }
  0x1f   :  { %438 = vmatpush3.msra.mxu1 %v105_v18  ;;  %263 = vmatprep.subr.mxu0 %v205_v42  ;;  %v234_v18 = vrot.slane %v379_v4, %v233_v15 }
  0x20   :  { %439 = vmatprep.subr.mxu1 %v455_v0  ;;  %264 = vmatpush1.msra.mxu0 %v204_v43  ;;  %v459_v0 = vmov 2  }
  0x21   :  { %440 = vmatpush3.msra.mxu1 %v104_v19  ;;  %265 = vmatprep.subr.mxu0 %v203_v44 }
  0x22   :  { %266 = vmatpush1.msra.mxu0 %v202_v45  ;;  %317 = vrot.lane.b32.xlu0 %v315_v57, %s457_s13 }
  0x23   :  { %267 = vmatprep.subr.mxu0 %v201_v46  ;;  %450 = vset.pattern.permute.xlu0 %v459_v0 }
  0x24   :  { %268 = vmatpush1.msra.mxu0 %v200_v52 }
  0x25   :  { %269 = vmatprep.subr.mxu0 %v199_v53 }
  0x26   :  { %270 = vmatpush1.msra.mxu0 %v198_v54 }
  0x27   :  { %271 = vmatprep.subr.mxu0 %v197_v55 }
  0x28   :  { %272 = vmatpush1.msra.mxu0 %v196_v56 }
  0x94   :  { %v318_v11 = vpop.permute.xlu0 %317 }
  0xc5   :  { %v99_v48 = vpop.f32.mrf.mxu0 }
  0xc6   :  { %v100_v49 = vadd.f32 %v375_v47, %v99_v48 }
  0xc7   :  { %v408_v50 = vpop.f32.mrf.mxu0 }
  0xc8   :  { %v103_v51 = vmax.f32 %v100_v49, 0.0 }
  0xca   :  { %442 = vmatmul.mubr.f32.vlgmr.msra.gmra.mxu1 %v103_v51 }
 0x18a   :  { %v191_v59 = vpop.f32.mrf.mxu1 }
 0x18b   :  { %v192_v60 = vadd.f32 %v378_v58, %v191_v59 }
 0x18c   :  { %v443_v61 = vpop.f32.mrf.mxu1 }
 0x18d   :  { %v195_v62 = vmax.f32 %v192_v60, 0.0 }
 0x18f   :  { %306 = vmatmul.mubr.f32.vlgmr.msra.gmra.mxu0 %v195_v62 }
 0x24f   :  { %v307_v6 = vpop.f32.mrf.mxu0 }
 0x250   :  { %v308_v23 = vadd.f32 %v307_v6, %v234_v18 }
 0x251   :  { %v309_v7 = vpop.f32.mrf.mxu0 }
 0x252   :  { %v310_v8 = vadd.f32 %v309_v7, %v238_v5 }
 0x254   :  { %v312_v9 = vmul.f32 0.5, %v310_v8 }
 0x256   :  { %v313_v10 = vmul.f32 1.442695, %v312_v9 }
 0x258   :  { %453 = vpow2.f32 %v313_v10 }
 0x265   :  { %v454_v12 = vpop.eup %453 }
 0x266   :  { %v320_v13 = vmul.f32 %v454_v12, %v318_v11 }
 0x268   :  { %337 = vperm.xlu1 %451, %v320_v13   ;;  %328 = vperm.xlu0 %450, %v320_v13  }
 0x26c   :  { %322 = vrot.lane.b32.xlu0 %v320_v13, %s460_s17 }
 0x26d   :  { %452 = vset.pattern.permute.xlu0 %v458_v63 }
 0x2e3   :  { %v338_v19 = vpop.permute.xlu1 %337  ;;  %v329_v20 = vpop.permute.xlu0 %328 }
 0x2e4   :  { %v344_v21 = vmul.f32 %v343_v16, %v338_v19  ;;  %v335_v22 = vmul.f32 %v334_v17, %v329_v20 }
 0x2e6   :  { %v345_v24 = vadd.f32 %v344_v21, %v335_v22 }
 0x2e7   :  { %v323_v32 = vpop.permute.xlu0 %322 }
 0x2e8   :  { %v346_v25 = vadd.f32 %v345_v24, %v308_v23  ;;  %v325_v33 = vadd.f32 %v323_v32, %v310_v8 }
 0x2ea   :  { %v347_v27 = vmax.f32 %v346_v25, 0.0 }
 0x2ec   :  { %v354_v28 = vmul.f32 %v380_v26, %v347_v27 }
 0x2ee   :  { %355 = vadd.xlane.f32.xlu1 %v354_v28 }
 0x377   :  { %v356_v30 = vpop.xlane.xlu1 %355 }
 0x378   :  { %v361_v31 = vadd.f32 %v381_v29, %v356_v30 }
 0x37a   :  { %363 = vrot.lane.b32.xlu0 %v361_v31, %s457_s13 }
 0x3ec   :  { %v364_v34 = vpop.permute.xlu0 %363 }
 0x3ed   :  { %v367_v35 = vsel %vm366_vm3, %v325_v33, %v364_v34 }
 0x3ee   :  { %v369_v36 = vsel %vm368_vm4, %v367_v35, 0.0 }
 0x3ef   :  { %370 = vst [vmem:[%s671_s4] sm:$0xff] %v369_v36 }

</bundles_post_ra>
